<compile_context>
chip_gen: v5e
topology: v5e:2x2
jax: 0.10.0
libtpu: 0.0.40
codegen_flags: <defaults>
</compile_context>

<pallas_src>
import functools

import jax
import jax.numpy as jnp
from jax.experimental import pallas as pl
from jax.experimental.pallas import tpu as pltpu

Q_MAX = 127.0  # 2 ** (8 - 1) - 1


def _round_up(x: int, m: int) -> int:
    return (x + m - 1) // m * m


def _w8a8_linear_kernel(x_ref, wq_ref, ws_ref, b_ref, o_ref, *, quantize_output: bool):
    """One (tm, tn) output tile of the fused per-token-fakequant linear.

    x_ref : (tm, K)  activation tile (full feature dim -> exact per-token absmax)
    wq_ref: (K, tn)  transposed integer weight codes, stored as bf16 (exact)
    ws_ref: (1, tn)  per-output-channel weight scales (f32)
    b_ref : (1, tn)  bias (f32)
    o_ref : (tm, tn) output tile
    """
    x = x_ref[...].astype(jnp.float32)                           # (tm, K)

    # --- per-token activation quant (absmax over the full feature dim) ---
    absmax = jnp.max(jnp.abs(x), axis=-1, keepdims=True)         # (tm, 1)
    s_x = jnp.maximum(absmax, 1e-5) / Q_MAX
    # Exact divide kept (not approx reciprocal): round() can flip on half-way
    # points and would break bit-parity with the fake-quant reference.
    q_x = jnp.round(x / s_x).astype(jnp.bfloat16)                # ints <=127, exact in bf16

    # --- integer-valued bf16 matmul on the MXU, f32 accumulation ---
    acc = jnp.dot(q_x, wq_ref[...], preferred_element_type=jnp.float32)  # (tm, tn)

    # --- deferred scaling epilogue: per-token (rows) x per-channel (cols) ---
    y = acc * s_x * ws_ref[...].astype(jnp.float32)
    y = y + b_ref[...].astype(jnp.float32)

    if quantize_output:
        # per-token output fake-quant (only valid when tn spans the full N row;
        # the wrapper enforces that).
        o_abs = jnp.max(jnp.abs(y), axis=-1, keepdims=True)
        s_o = jnp.maximum(o_abs, 1e-5) / Q_MAX
        y = jnp.round(y / s_o) * s_o

    o_ref[...] = y.astype(o_ref.dtype)


def quantize_weight_per_channel_absmax(w: jnp.ndarray) -> jnp.ndarray:
    """Construction-time weight fake-quant (per output channel). Plain JAX glue."""
    scales = jnp.maximum(jnp.max(jnp.abs(w), axis=-1, keepdims=True), 1e-5) / Q_MAX
    return jnp.round(w / scales) * scales


def w8a8_linear(x: jnp.ndarray,
                weight: jnp.ndarray,
                bias: jnp.ndarray | None = None,
                *,
                quantize_output: bool = False,
                tm: int = 256,
                tn: int = 512) -> jnp.ndarray:
    """Forward pass of W8A8Linear.

    x      : (..., in_features)
    weight : (out_features, in_features)  -- already fake-quantized (from_float)
    bias   : (1, out_features) or None
    """
    orig_shape = x.shape
    K = orig_shape[-1]
    N = weight.shape[0]
    x2d = x.reshape(-1, K)
    M = x2d.shape[0]
    out_dtype = x.dtype

    # --- glue: recover the integer per-channel weight codes + scales.
    # For an already fake-quantized weight this recovers the original int8
    # codes exactly.  (In a real deployment this would be precomputed once.)
    w_f32 = weight.astype(jnp.float32)
    w_scale = jnp.maximum(jnp.max(jnp.abs(w_f32), axis=-1, keepdims=True), 1e-5) / Q_MAX  # (N, 1)
    w_int = jnp.round(w_f32 / w_scale)                          # ints in [-127, 127]
    wq_t = w_int.T.astype(jnp.bfloat16)                         # (K, N), exact in bf16
    ws = w_scale.reshape(1, N).astype(jnp.float32)              # (1, N)

    if bias is None:
        b = jnp.zeros((1, N), jnp.float32)
    else:
        b = bias.reshape(1, N).astype(jnp.float32)

    # --- tile sizes (clamped for small problems, padded otherwise) ---
    tm = max(8, min(tm, _round_up(M, 8)))
    tm = _round_up(tm, 8)
    if quantize_output:
        # per-token output absmax needs the whole output row resident.
        tn = _round_up(N, 128)
    else:
        tn = max(128, min(tn, _round_up(N, 128)))
        tn = _round_up(tn, 128)

    Mp = _round_up(M, tm)
    Np = _round_up(N, tn)

    if Mp != M:
        x2d = jnp.pad(x2d, ((0, Mp - M), (0, 0)))
    if Np != N:
        wq_t = jnp.pad(wq_t, ((0, 0), (0, Np - N)))
        ws = jnp.pad(ws, ((0, 0), (0, Np - N)))
        b = jnp.pad(b, ((0, 0), (0, Np - N)))

    grid = (Mp // tm, Np // tn)
    kernel = functools.partial(_w8a8_linear_kernel, quantize_output=quantize_output)

    out = pl.pallas_call(
        kernel,
        out_shape=jax.ShapeDtypeStruct((Mp, Np), out_dtype),
        grid_spec=pltpu.PrefetchScalarGridSpec(
            num_scalar_prefetch=0,
            grid=grid,
            in_specs=[
                pl.BlockSpec((tm, K), lambda i, j: (i, 0)),    # activation tile (full K)
                pl.BlockSpec((K, tn), lambda i, j: (0, j)),    # weight column tile (streams over N)
                pl.BlockSpec((1, tn), lambda i, j: (0, j)),    # per-channel weight scales
                pl.BlockSpec((1, tn), lambda i, j: (0, j)),    # bias
            ],
            out_specs=pl.BlockSpec((tm, tn), lambda i, j: (i, j)),
        ),
        compiler_params=pltpu.CompilerParams(
            dimension_semantics=("parallel", "parallel"),
            vmem_limit_bytes=64 * 1024 * 1024,
        ),
    )(x2d, wq_t, ws, b)

    out = out[:M, :N]
    return out.reshape(*orig_shape[:-1], N)


def _reference(x, weight, bias, quantize_output=False):
    """Pure-JAX reference of the PyTorch forward (per-token act quant)."""
    x = x.astype(jnp.float32)
    s = jnp.maximum(jnp.max(jnp.abs(x), axis=-1, keepdims=True), 1e-5) / Q_MAX
    q_x = jnp.round(x / s) * s
    y = q_x @ weight.astype(jnp.float32).T + bias.reshape(1, -1).astype(jnp.float32)
    if quantize_output:
        so = jnp.maximum(jnp.max(jnp.abs(y), axis=-1, keepdims=True), 1e-5) / Q_MAX
        y = jnp.round(y / so) * so
    return y


if __name__ == "__main__":
    # Small shapes consistent with a Linear layer: batch=2, seq=8, hidden=128 -> 256
    B, T, IN_F, OUT_F = 2, 8, 128, 256

    key = jax.random.PRNGKey(0)
    k_x, k_w = jax.random.split(key)

    x = jax.random.normal(k_x, (B, T, IN_F), dtype=jnp.float32)
    # __init__ uses randn weights; from_float applies per-channel fake-quant.
    weight_fp = jax.random.normal(k_w, (OUT_F, IN_F), dtype=jnp.float32)
    weight = quantize_weight_per_channel_absmax(weight_fp)
    bias = jnp.zeros((1, OUT_F), dtype=jnp.float32)  # module registers zero bias

    y = w8a8_linear(x, weight, bias, quantize_output=False)
    y = jax.block_until_ready(y)

    y_ref = _reference(x, weight, bias, quantize_output=False)
    assert y.shape == (B, T, OUT_F), y.shape
    assert jnp.allclose(y, y_ref, atol=1e-3, rtol=1e-3), \
        float(jnp.max(jnp.abs(y - y_ref)))

    # Also exercise the quantize_output=True branch once.
    y_q = jax.block_until_ready(w8a8_linear(x, weight, bias, quantize_output=True))
    y_q_ref = _reference(x, weight, bias, quantize_output=True)
    assert jnp.allclose(y_q, y_q_ref, atol=1e-3, rtol=1e-3), \
        float(jnp.max(jnp.abs(y_q - y_q_ref)))

    print("KERNEL_OK")
</pallas_src>

<mosaic_0001>
module attributes {stable_mosaic.version = 11 : i64} {
  func.func @_w8a8_linear_kernel(%arg0: i32, %arg1: i32, %arg2: memref<16x128xf32, #tpu.memory_space<vmem>>, %arg3: memref<128x256xbf16, #tpu.memory_space<vmem>>, %arg4: memref<1x256xf32, #tpu.memory_space<vmem>>, %arg5: memref<1x256xf32, #tpu.memory_space<vmem>>, %arg6: memref<16x256xf32, #tpu.memory_space<vmem>>) attributes {dimension_semantics = [#tpu.dimension_semantics<parallel>, #tpu.dimension_semantics<parallel>], iteration_bounds = array<i64: 1, 1>, scalar_prefetch = 0 : i64, scratch_operands = 0 : i64, tpu.core_type = #tpu.core_type<tc>, window_params = [{transform_indices = @transform_0, window_bounds = array<i64: 16, 128>}, {transform_indices = @transform_1, window_bounds = array<i64: 128, 256>}, {transform_indices = @transform_2, window_bounds = array<i64: 1, 256>}, {transform_indices = @transform_3, window_bounds = array<i64: 1, 256>}, {transform_indices = @transform_4, window_bounds = array<i64: 16, 256>}]} {
    %c0 = arith.constant 0 : index
    %c0_0 = arith.constant 0 : index
    %0 = vector.load %arg2[%c0, %c0_0] : memref<16x128xf32, #tpu.memory_space<vmem>>, vector<16x128xf32>
    %1 = math.absf %0 : vector<16x128xf32>
    %cst = arith.constant dense<0xFF800000> : vector<16xf32>
    %2 = vector.multi_reduction <maximumf>, %1, %cst [1] : vector<16x128xf32> to vector<16xf32>
    %3 = vector.shape_cast %2 : vector<16xf32> to vector<16x1xf32>
    %cst_1 = arith.constant 9.99999974E-6 : f32
    %4 = vector.broadcast %cst_1 : f32 to vector<16x1xf32>
    %5 = arith.maximumf %3, %4 : vector<16x1xf32>
    %cst_2 = arith.constant 1.270000e+02 : f32
    %6 = vector.broadcast %cst_2 : f32 to vector<16x1xf32>
    %7 = arith.divf %5, %6 : vector<16x1xf32>
    %8 = vector.broadcast %7 : vector<16x1xf32> to vector<16x128xf32>
    %9 = arith.divf %0, %8 : vector<16x128xf32>
    %10 = math.roundeven %9 : vector<16x128xf32>
    %11 = arith.truncf %10 : vector<16x128xf32> to vector<16x128xbf16>
    %c0_3 = arith.constant 0 : index
    %c0_4 = arith.constant 0 : index
    %12 = vector.load %arg3[%c0_3, %c0_4] : memref<128x256xbf16, #tpu.memory_space<vmem>>, vector<128x256xbf16>
    %cst_5 = arith.constant dense<0.000000e+00> : vector<16x256xf32>
    %13 = tpu.matmul %11, %12, %cst_5 {dimension_numbers = #tpu.dot_dimension_numbers<[1], [0], [0], [1], [0, 0, 1, 1], [], []>} : vector<16x128xbf16>, vector<128x256xbf16>, vector<16x256xf32> -> vector<16x256xf32>
    %14 = vector.broadcast %7 : vector<16x1xf32> to vector<16x256xf32>
    %15 = arith.mulf %13, %14 : vector<16x256xf32>
    %c0_6 = arith.constant 0 : index
    %c0_7 = arith.constant 0 : index
    %16 = vector.load %arg4[%c0_6, %c0_7] : memref<1x256xf32, #tpu.memory_space<vmem>>, vector<1x256xf32>
    %17 = vector.broadcast %16 : vector<1x256xf32> to vector<16x256xf32>
    %18 = arith.mulf %15, %17 : vector<16x256xf32>
    %c0_8 = arith.constant 0 : index
    %c0_9 = arith.constant 0 : index
    %19 = vector.load %arg5[%c0_8, %c0_9] : memref<1x256xf32, #tpu.memory_space<vmem>>, vector<1x256xf32>
    %20 = vector.broadcast %19 : vector<1x256xf32> to vector<16x256xf32>
    %21 = arith.addf %18, %20 : vector<16x256xf32>
    %c0_10 = arith.constant 0 : index
    %c0_11 = arith.constant 0 : index
    %22 = vector.load %arg6[%c0_10, %c0_11] : memref<16x256xf32, #tpu.memory_space<vmem>>, vector<16x256xf32>
    tpu.vector_store %arg6[%c0_10, %c0_11], %21 {strides = array<i32>} : memref<16x256xf32, #tpu.memory_space<vmem>>, vector<16x256xf32>,
    return
  }
  func.func @transform_0(%arg0: i32, %arg1: i32) -> (i32, i32) {
    %c0_i32 = arith.constant 0 : i32
    %c0_i32_0 = arith.constant 0 : i32
    return %arg0, %c0_i32 : i32, i32
  }
  func.func @transform_1(%arg0: i32, %arg1: i32) -> (i32, i32) {
    %c0_i32 = arith.constant 0 : i32
    %c0_i32_0 = arith.constant 0 : i32
    return %c0_i32, %arg1 : i32, i32
  }
  func.func @transform_2(%arg0: i32, %arg1: i32) -> (i32, i32) {
    %c0_i32 = arith.constant 0 : i32
    %c0_i32_0 = arith.constant 0 : i32
    return %c0_i32, %arg1 : i32, i32
  }
  func.func @transform_3(%arg0: i32, %arg1: i32) -> (i32, i32) {
    %c0_i32 = arith.constant 0 : i32
    %c0_i32_0 = arith.constant 0 : i32
    return %c0_i32, %arg1 : i32, i32
  }
  func.func @transform_4(%arg0: i32, %arg1: i32) -> (i32, i32) {
    %c0_i32 = arith.constant 0 : i32
    return %arg0, %arg1 : i32, i32
  }
}

</mosaic_0001>

<bundles_post_ra>
// kernel: tpu_custom_call.1
= control target key start
LH: loop header
LB: loop body
LE: loop exit
PB: predicated region body
PF: predicated region fallthrough
CT: control target
= control target key end

     0   :  { %9 = vsyncpa [#allocation3], 0  ;;  %s575_s0 = inlined_call_operand.hbm [shape: f32[16,128], index: 0, kind: input, shape index: {}]   ;;  %s576_s1 = inlined_call_operand.hbm [shape: bf16[128,256], index: 1, kind: input, shape index: {}]   ;;  %s577_s2 = inlined_call_operand.hbm [shape: f32[1,256], index: 2, kind: input, shape index: {}]   ;;  %s578_s3 = inlined_call_operand.vmem [shape: f32[1,256], index: 3, kind: input, shape index: {}]   ;;  %s579_s4 = inlined_call_operand.hbm [shape: f32[16,256], index: 4, kind: output, shape index: {}]  }
   0x1   :  { %10 = vsyncpa [#allocation6], 0 }
   0x2   :  { %11 = vsyncpa [#allocation4], 0  ;;  %s29_s17 = sshll.u32 %s576_s1, 4  ;;  %s500_s18 = smov [#allocation5]   ;;  %s30_s17 = int_to_ptr.hbm [resolvable:$true] %s29_s17 }
   0x3   :  { %s31_s19 = sshll.u32 %s500_s18, 4  ;;  %s16_s22 = sshll.u32 %s575_s0, 4  ;;  %s32_s19 = int_to_ptr.vmem [resolvable:$true] %s31_s19  ;;  %s17_s22 = int_to_ptr.hbm [resolvable:$true] %s16_s22 }
   0x4   :  { %s501_s23 = smov 128   ;;  %s502_s24 = smov 8  }
   0x5   :  { %37 = dma.hbm_to_vmem [thread:$0]  %s30_s17, 2048, %s32_s19, [#allocation6], %s501_s23, %s501_s23, %s502_s24  }
   0x6   :  { %s503_s25 = smov [#allocation2]   ;;  %s43_s29 = sshll.u32 %s577_s2, 4  ;;  %s44_s29 = int_to_ptr.hbm [resolvable:$true] %s43_s29 }
   0x7   :  { %s18_s26 = sshll.u32 %s503_s25, 4  ;;  %s504_s1 = smov [#allocation7]   ;;  %s19_s26 = int_to_ptr.vmem [resolvable:$true] %s18_s26 }
   0x8   :  { %24 = dma.hbm_to_vmem [thread:$0]  %s17_s22, 256, %s19_s26, [#allocation3], %s501_s23, %s501_s23, %s502_s24  }
   0x9   :  { %s45_s30 = sshll.u32 %s504_s1, 4  ;;  %s46_s30 = int_to_ptr.vmem [resolvable:$true] %s45_s30 }
   0xa   :  { %48 = dma.hbm_to_vmem [thread:$0]  %s44_s29, 32, %s46_s30, [#allocation6]  }
   0xb   :  { %494 = dma.done.wait [#allocation3], 256  }
   0xc   :  { %495 = vsyncadd [#allocation3], 4294967040 }
   0xd   :  { %496 = dma.done.wait [#allocation6], 2080  }
   0xe   :  { %497 = vsyncadd [#allocation6], 4294965216  ;;  %v543_v0 = vld [vmem:[#allocation2] sm:$0xff]  ;;  %v546_v2 = vld [vmem:[#allocation2 + $0x8] sm:$0xff]  ;;  %v505_v4 = vmov 127.0   ;;  %s273_s8 = sshll.u32 %s579_s4, 4  ;;  %s274_s8 = int_to_ptr.hbm [resolvable:$true] %s273_s8 }
   0xf   :  { %v65_v1 = vand.u32 2147483647, %v543_v0  ;;  %v66_v3 = vand.u32 2147483647, %v546_v2  ;;  %392 = vrcp.f32 %v505_v4  ;;  %v345_v5 = vld [vmem:[#allocation5 + $0x70] sm:$0xf] }
  0x10   :  { %v366_v6 = vld [vmem:[#allocation5 + $0x74] sm:$0xf0]  ;;  %v365_v7 = vld [vmem:[#allocation5 + $0x74] sm:$0xf]  ;;  %v347_v9 = vld [vmem:[#allocation5 + $0x78] sm:$0xf0] }
  0x11   :  { %67 = vmax.xlane.f32.xlu0 %v65_v1  ;;  %v346_v8 = vor.u32 %v366_v6, %v345_v5  ;;  %v350_v10 = vor.u32 %v365_v7, %v347_v9  ;;  %v337_v12 = vld [vmem:[#allocation5 + $0x60] sm:$0xf]  ;;  %v364_v13 = vld [vmem:[#allocation5 + $0x64] sm:$0xf0]  ;;  %v363_v14 = vld [vmem:[#allocation5 + $0x64] sm:$0xf] }
  0x12   :  { %v338_v15 = vor.u32 %v364_v13, %v337_v12  ;;  %v339_v16 = vld [vmem:[#allocation5 + $0x68] sm:$0xf0]  ;;  %v329_v17 = vld [vmem:[#allocation5 + $0x50] sm:$0xf]  ;;  %v362_v18 = vld [vmem:[#allocation5 + $0x54] sm:$0xf0] }
  0x13   :  { %211 = vmatpush.bf16.msra.mxu0 %v346_v8  ;;  %225 = vmatpush.bf16.msra.mxu1 %v350_v10  ;;  %v342_v19 = vor.u32 %v363_v14, %v339_v16  ;;  %v361_v20 = vld [vmem:[#allocation5 + $0x54] sm:$0xf]  ;;  %v331_v21 = vld [vmem:[#allocation5 + $0x58] sm:$0xf0]  ;;  %v330_v23 = vor.u32 %v362_v18, %v329_v17  ;;  %v321_v25 = vld [vmem:[#allocation5 + $0x40] sm:$0xf] }
  0x14   :  { %v334_v24 = vor.u32 %v361_v20, %v331_v21  ;;  %v360_v26 = vld [vmem:[#allocation5 + $0x44] sm:$0xf0]  ;;  %v359_v27 = vld [vmem:[#allocation5 + $0x44] sm:$0xf]  ;;  %v323_v28 = vld [vmem:[#allocation5 + $0x48] sm:$0xf0] }
  0x15   :  { %v393_v11 = vpop.eup %392  ;;  %v322_v30 = vor.u32 %v360_v26, %v321_v25  ;;  %v326_v31 = vor.u32 %v359_v27, %v323_v28  ;;  %v313_v32 = vld [vmem:[#allocation5 + $0x30] sm:$0xf]  ;;  %v358_v33 = vld [vmem:[#allocation5 + $0x34] sm:$0xf0]  ;;  %v357_v34 = vld [vmem:[#allocation5 + $0x34] sm:$0xf] }
  0x16   :  { %v74_v22 = vmul.f32 127.0, %v393_v11  ;;  %v315_v35 = vld [vmem:[#allocation5 + $0x38] sm:$0xf0]  ;;  %v314_v37 = vor.u32 %v358_v33, %v313_v32  ;;  %v305_v39 = vld [vmem:[#allocation5 + $0x20] sm:$0xf]  ;;  %vm78_vm0 = vweird.f32 %v393_v11  ;;  %s507_s9 = smov 256  }
  0x17   :  { %212 = vmatpush.bf16.msra.mxu0 %v338_v15  ;;  %226 = vmatpush.bf16.msra.mxu1 %v342_v19  ;;  %v318_v38 = vor.u32 %v357_v34, %v315_v35  ;;  %v356_v40 = vld [vmem:[#allocation5 + $0x24] sm:$0xf0]  ;;  %v355_v41 = vld [vmem:[#allocation5 + $0x24] sm:$0xf]  ;;  %v307_v42 = vld [vmem:[#allocation5 + $0x28] sm:$0xf0] }
  0x18   :  { %v75_v29 = vsub.f32 1.0, %v74_v22  ;;  %v306_v44 = vor.u32 %v356_v40, %v305_v39  ;;  %v310_v45 = vor.u32 %v355_v41, %v307_v42  ;;  %v297_v46 = vld [vmem:[#allocation5 + $0x10] sm:$0xf]  ;;  %v354_v47 = vld [vmem:[#allocation5 + $0x14] sm:$0xf0]  ;;  %s508_s10 = smov 16  }
  0x19   :  { %69 = vmax.xlane.f32.xlu0 %v66_v3  ;;  %v353_v48 = vld [vmem:[#allocation5 + $0x14] sm:$0xf]  ;;  %v299_v49 = vld [vmem:[#allocation5 + $0x18] sm:$0xf0]  ;;  %v298_v52 = vor.u32 %v354_v47, %v297_v46  ;;  %v289_v55 = vld [vmem:[#allocation5] sm:$0xf] }
  0x1a   :  { %v76_v36 = vmul.f32 %v393_v11, %v75_v29  ;;  %v302_v54 = vor.u32 %v353_v48, %v299_v49  ;;  %v352_v56 = vld [vmem:[#allocation5 + $0x4] sm:$0xf0]  ;;  %v351_v57 = vld [vmem:[#allocation5 + $0x4] sm:$0xf]  ;;  %v291_v58 = vld [vmem:[#allocation5 + $0x8] sm:$0xf0] }
  0x1b   :  { %213 = vmatpush.bf16.msra.mxu0 %v330_v23  ;;  %227 = vmatpush.bf16.msra.mxu1 %v334_v24  ;;  %v290_v60 = vor.u32 %v352_v56, %v289_v55  ;;  %v294_v61 = vor.u32 %v351_v57, %v291_v58  ;;  %v243_v39 = vld [vmem:[#allocation7] sm:$0x3] }
  0x1c   :  { %v77_v43 = vadd.f32 %v393_v11, %v76_v36  ;;  %v245_v40 = vperm.slane %v243_v39, 0  ;;  %v246_v41 = vperm.slane %v243_v39, 1 }
  0x1e   :  { %v79_v50 = vsel %vm78_vm0, %v393_v11, %v77_v43 }
  0x1f   :  { %214 = vmatpush.bf16.msra.mxu0 %v322_v30  ;;  %228 = vmatpush.bf16.msra.mxu1 %v326_v31 }
  0x23   :  { %215 = vmatpush.bf16.msra.mxu0 %v314_v37  ;;  %229 = vmatpush.bf16.msra.mxu1 %v318_v38 }
  0x27   :  { %216 = vmatpush.bf16.msra.mxu0 %v306_v44  ;;  %230 = vmatpush.bf16.msra.mxu1 %v310_v45 }
  0x2b   :  { %217 = vmatpush.bf16.msra.mxu0 %v298_v52  ;;  %231 = vmatpush.bf16.msra.mxu1 %v302_v54 }
  0x2f   :  { %218 = vmatpush.bf16.msra.mxu0 %v290_v60  ;;  %232 = vmatpush.bf16.msra.mxu1 %v294_v61 }
  0x84   :  { %v68_v51 = vpop.xlane.xlu0 %67 }
  0x85   :  { %v71_v53 = vmax.f32 %v68_v51, 1e-05 }
  0x87   :  { %v549_v59 = vmul.f32 %v79_v50, %v71_v53 }
  0x89   :  { %394 = vrcp.f32 %v549_v59  ;;  %v93_v6 = vand.u32 2147483648, %v549_v59  ;;  %v91_v8 = vand.u32 2147483647, %v549_v59  ;;  %vm87_vm2 = vweird.f32 %v549_v59 }
  0x8b   :  { %v94_v11 = vor.u32 1.1754944e-38, %v93_v6  ;;  %vm92_vm4 = vcmp.eq.f32.partialorder %v91_v8, 8.507059e+37 }
  0x8c   :  { %v70_v62 = vpop.xlane.xlu0 %69 }
  0x8d   :  { %v72_v63 = vmax.f32 %v70_v62, 1e-05 }
  0x8f   :  { %v395_v1 = vpop.eup %394  ;;  %v552_v3 = vmul.f32 %v79_v50, %v72_v63 }
  0x90   :  { %v83_v4 = vmul.f32 %v395_v1, %v549_v59  ;;  %vm88_vm1 = vweird.f32 %v395_v1 }
  0x91   :  { %396 = vrcp.f32 %v552_v3  ;;  %vm89_vm3 = vmor %vm87_vm2, %vm88_vm1  ;;  %v108_v17 = vand.u32 2147483648, %v552_v3  ;;  %v106_v19 = vand.u32 2147483647, %v552_v3  ;;  %vm102_vm6 = vweird.f32 %v552_v3 }
  0x92   :  { %v84_v5 = vsub.f32 1.0, %v83_v4 }
  0x93   :  { %v109_v22 = vor.u32 1.1754944e-38, %v108_v17  ;;  %vm107_vm8 = vcmp.eq.f32.partialorder %v106_v19, 8.507059e+37 }
  0x94   :  { %v85_v7 = vmul.f32 %v395_v1, %v84_v5 }
  0x96   :  { %v86_v9 = vadd.f32 %v395_v1, %v85_v7 }
  0x97   :  { %v397_v10 = vpop.eup %396 }
  0x98   :  { %v90_v12 = vsel %vm89_vm3, %v395_v1, %v86_v9  ;;  %v98_v13 = vmul.f32 %v397_v10, %v552_v3  ;;  %vm103_vm5 = vweird.f32 %v397_v10 }
  0x99   :  { %v95_v14 = vsel %vm92_vm4, %v94_v11, %v90_v12  ;;  %vm104_vm7 = vmor %vm102_vm6, %vm103_vm5 }
  0x9a   :  { %v96_v15 = vmul.f32 %v95_v14, %v543_v0  ;;  %v99_v16 = vsub.f32 1.0, %v98_v13 }
  0x9c   :  { %v100_v18 = vmul.f32 %v397_v10, %v99_v16  ;;  %v369_v20 = vcvt.f32.s32 %v96_v15  ;;  %v372_v28 = vand.u32 2147483648, %v96_v15  ;;  %v367_v30 = vand.u32 2147483647, %v96_v15 }
  0x9e   :  { %v101_v21 = vadd.f32 %v397_v10, %v100_v18  ;;  %v370_v24 = vcvt.s32.f32 %v369_v20  ;;  %vm368_vm9 = vcmp.lt.f32.partialorder %v367_v30, 8388608.0 }
  0xa0   :  { %v105_v23 = vsel %vm104_vm7, %v397_v10, %v101_v21  ;;  %v371_v0 = vand.u32 2147483647, %v370_v24 }
  0xa1   :  { %v110_v25 = vsel %vm107_vm8, %v109_v22, %v105_v23 }
  0xa2   :  { %v111_v26 = vmul.f32 %v110_v25, %v546_v2  ;;  %v373_v32 = vor.u32 %v372_v28, %v371_v0  ;;  %v253_v2 = vld [vmem:[%s578_s3] sm:$0x3]  ;;  %s506_s3 = smov [#allocation8]  }
  0xa3   :  { %v255_v45 = vperm.slane %v253_v2, 0  ;;  %v256_v47 = vperm.slane %v253_v2, 1  ;;  %s271_s5 = sshll.u32 %s506_s3, 4  ;;  %s272_s5 = int_to_ptr.vmem [resolvable:$true] %s271_s5 }
  0xa4   :  { %v377_v27 = vcvt.f32.s32 %v111_v26  ;;  %v375_v31 = vand.u32 2147483647, %v111_v26  ;;  %v380_v34 = vand.u32 2147483648, %v111_v26  ;;  %v374_v36 = vsel %vm368_vm9, %v373_v32, %v96_v15 }
  0xa6   :  { %v378_v29 = vcvt.s32.f32 %v377_v27  ;;  %vm376_vm10 = vcmp.lt.f32.partialorder %v375_v31, 8388608.0 }
  0xa8   :  { %v379_v33 = vand.u32 2147483647, %v378_v29 }
  0xaa   :  { %v381_v35 = vor.u32 %v380_v34, %v379_v33 }
  0xac   :  { %v382_v37 = vsel %vm376_vm10, %v381_v35, %v111_v26 }
  0xad   :  { %v114_v38 = vpack.c.bf16 %v382_v37, %v374_v36 }
  0xaf   :  { %219 = vmatmul.bf16.vlgmr.msra.gmra.mxu0 %v114_v38  ;;  %233 = vmatmul.bf16.vlgmr.msra.gmra.mxu1 %v114_v38 }
 0x12c   :  { %v220_v42 = vpop.f32.mrf.mxu0  ;;  %v234_v43 = vpop.f32.mrf.mxu1 }
 0x12d   :  { %v239_v44 = vmul.f32 %v220_v42, %v549_v59  ;;  %v240_v46 = vmul.f32 %v234_v43, %v549_v59 }
 0x12f   :  { %v249_v48 = vmul.f32 %v245_v40, %v239_v44  ;;  %v250_v49 = vmul.f32 %v246_v41, %v240_v46 }
 0x131   :  { %v259_v50 = vadd.f32 %v255_v45, %v249_v48  ;;  %v260_v51 = vadd.f32 %v256_v47, %v250_v49 }
 0x133   :  { %263 = vst [vmem:[#allocation8] sm:$0xff] %v259_v50 }
 0x134   :  { %264 = vst [vmem:[#allocation8 + $0x8] sm:$0xff] %v260_v51  ;;  %v222_v52 = vpop.f32.mrf.mxu0  ;;  %v236_v53 = vpop.f32.mrf.mxu1 }
 0x135   :  { %v241_v54 = vmul.f32 %v222_v52, %v552_v3  ;;  %v242_v55 = vmul.f32 %v236_v53, %v552_v3 }
 0x137   :  { %v251_v56 = vmul.f32 %v245_v40, %v241_v54  ;;  %v252_v57 = vmul.f32 %v246_v41, %v242_v55 }
 0x139   :  { %v261_v58 = vadd.f32 %v255_v45, %v251_v56  ;;  %v262_v59 = vadd.f32 %v256_v47, %v252_v57 }
 0x13b   :  { %265 = vst [vmem:[#allocation8 + $0x10] sm:$0xff] %v261_v58 }
 0x13c   :  { %266 = vst [vmem:[#allocation8 + $0x18] sm:$0xff] %v262_v59 }
 0x13d   :  { %279 = dma.vmem_to_hbm [thread:$0]  %s272_s5, 512, %s274_s8, [#allocation4], %s507_s9, %s507_s9, %s508_s10  }
 0x13e   :  { %498 = dma.done.wait [#allocation4], 512  }
 0x13f   :  { %499 = vsyncadd [#allocation4], 4294966784 }
 0x140   :  { %284 = vsyncpa [#allocation3], 1 }
 0x141   :  { %285 = vsyncpa [#allocation6], 1 }
 0x142   :  { %286 = vsyncpa [#allocation4], 1 }

</bundles_post_ra>
